<compile_context>
chip_gen: v7x
topology: tpu7x:2x2x1
jax: 0.10.0
libtpu: 0.0.40
codegen_flags: <defaults>
</compile_context>

<pallas_src>
import numpy as np
import jax
import jax.numpy as jnp
from jax.experimental import pallas as pl
from jax.experimental.pallas import tpu as pltpu


LANE = 128          # pad every channel axis to the 128-lane vreg width
_BN_EPS = 1e-5
_BN_SCALE = float(1.0 / np.sqrt(1.0 + _BN_EPS))   # gamma=1, beta=0, mean=0, var=1
VMEM_LIMIT = 64 * 1024 * 1024                     # <= physical VMEM on v5e/v6e/v7x


def _round_up(x, m):
    return ((x + m - 1) // m) * m


def _const_spec(shape):
    zeros = (0,) * len(shape)
    return pl.BlockSpec(shape, lambda *_: zeros)


def _pad_last(x, target):
    c = x.shape[-1]
    assert c <= target, "channel blocking beyond 128 lanes not implemented"
    if c == target:
        return x
    return jnp.pad(x, [(0, 0)] * (x.ndim - 1) + [(0, target - c)])


# ---------------------------------------------------------------------------
# Parameter preparation: fold BN scale into weights, pad channels to 128 lanes
# ---------------------------------------------------------------------------

def _prep_pw(w, cin_p, cout_p, bn=True):
    """(Cin, Cout) 1x1 conv weight -> BN-folded, zero-padded, bf16."""
    if bn:
        w = w * _BN_SCALE
    w = jnp.pad(w, ((0, cin_p - w.shape[0]), (0, cout_p - w.shape[1])))
    return w.astype(jnp.bfloat16)


def _prep_dw(w33c, c_p):
    """(3, 3, C) depthwise weight -> BN-folded, zero-padded, bf16 (VPU math)."""
    w = w33c * _BN_SCALE
    w = jnp.pad(w, ((0, 0), (0, 0), (0, c_p - w.shape[-1])))
    return w.astype(jnp.bfloat16)


def _prep_b(b, c_p):
    return jnp.pad(b, (0, c_p - b.shape[0])).reshape(1, c_p).astype(jnp.float32)


def make_params(key, c1_inplanes, c4_inplanes, c1_planes, planes,
                output_stride, num_classes):
    assert output_stride in (8, 16)
    dilations = [12, 24, 36] if output_stride == 8 else [6, 12, 18]
    keys = iter(jax.random.split(key, 64))
    LP = LANE

    def conv_w(cin, cout):
        return jax.random.normal(next(keys), (cin, cout), jnp.float32) * 0.05

    def dw_w(c):
        return jax.random.normal(next(keys), (3, 3, c), jnp.float32) * 0.05

    def zeros(c):
        return jnp.zeros((c,), jnp.float32)

    p = {'dilations': dilations, 'num_classes': num_classes}

    # ASPP pooling-branch 1x1 conv
    p['aspp_pool_w'] = _prep_pw(conv_w(c4_inplanes, planes), LP, LP)
    p['aspp_pool_b'] = _prep_b(zeros(planes), LP)
    # aspp0 1x1 conv
    p['aspp0_w'] = _prep_pw(conv_w(c4_inplanes, planes), LP, LP)
    p['aspp0_b'] = _prep_b(zeros(planes), LP)
    # aspp1..3 LightConvBlocks (depthwise 3x3 dilated + 1x1)
    for i in range(1, 4):
        p[f'aspp{i}_dw_w'] = _prep_dw(dw_w(c4_inplanes), LP)
        p[f'aspp{i}_dw_b'] = _prep_b(zeros(c4_inplanes), LP)
        p[f'aspp{i}_pw_w'] = _prep_pw(conv_w(c4_inplanes, planes), LP, LP)
        p[f'aspp{i}_pw_b'] = _prep_b(zeros(planes), LP)

    # fuse conv (5*planes -> planes); concat order (pool, x0, x1, x2, x3).
    # The pool slice becomes a bias outside the kernel; (x0,x1) and (x2,x3) are
    # stacked so the in-kernel fuse matmuls run with K=256.
    wf = conv_w(5 * planes, planes)
    sl = lambda i: wf[i * planes:(i + 1) * planes]
    p['fuse_w_pool'] = _prep_pw(sl(0), LP, LP)
    p['fuse_w_01'] = jnp.concatenate(
        [_prep_pw(sl(1), LP, LP), _prep_pw(sl(2), LP, LP)], axis=0)   # (2LP, LP)
    p['fuse_w_23'] = jnp.concatenate(
        [_prep_pw(sl(3), LP, LP), _prep_pw(sl(4), LP, LP)], axis=0)
    p['fuse_b'] = _prep_b(zeros(planes), LP)
    p['zeros_b'] = jnp.zeros((1, LP), jnp.float32)

    # c1 1x1 conv
    p['c1_w'] = _prep_pw(conv_w(c1_inplanes, c1_planes), LP, LP)
    p['c1_b'] = _prep_b(zeros(c1_planes), LP)

    # head fuse0 LightConvBlock on concat([C4_up(planes), c1(c1_planes)]);
    # depthwise weights split per channel group, pointwise weights stacked so
    # the concat is a single K=256 matmul.
    fin = planes + c1_planes
    dw0 = dw_w(fin)
    pw0 = conv_w(fin, planes)
    p['fuse0_dwA_w'] = _prep_dw(dw0[:, :, :planes], LP)
    p['fuse0_dwB_w'] = _prep_dw(dw0[:, :, planes:], LP)
    p['fuse0_dwA_b'] = _prep_b(zeros(planes), LP)
    p['fuse0_dwB_b'] = _prep_b(zeros(c1_planes), LP)
    p['fuse0_pw_w'] = jnp.concatenate(
        [_prep_pw(pw0[:planes], LP, LP), _prep_pw(pw0[planes:], LP, LP)], axis=0)
    p['fuse0_pw_b'] = _prep_b(zeros(planes), LP)

    # head fuse1 LightConvBlock
    p['fuse1_dw_w'] = _prep_dw(dw_w(planes), LP)
    p['fuse1_dw_b'] = _prep_b(zeros(planes), LP)
    p['fuse1_pw_w'] = _prep_pw(conv_w(planes, planes), LP, LP)
    p['fuse1_pw_b'] = _prep_b(zeros(planes), LP)

    # predict conv (1x1, true bias, no BN / act)
    p['pred_w'] = _prep_pw(conv_w(planes, num_classes), LP, LP, bn=False)
    p['pred_b'] = _prep_b(
        jax.random.normal(next(keys), (num_classes,), jnp.float32) * 0.05, LP)
    return p


# ---------------------------------------------------------------------------
# Generic 1x1 conv (+bias, +ReLU) as a tiled MXU matmul
# ---------------------------------------------------------------------------

def _matmul_kernel(relu):
    def kernel(x_ref, w_ref, b_ref, o_ref):
        acc = jnp.dot(x_ref[...], w_ref[...],
                      preferred_element_type=jnp.float32) + b_ref[...]
        if relu:
            acc = jnp.maximum(acc, 0.0)
        o_ref[...] = acc.astype(o_ref.dtype)
    return kernel


def pointwise_conv(x, w, b, relu=True, tile_m=1024, out_dtype=jnp.bfloat16):
    """x: (..., Cin_pad); w: (Cin_pad, Cout_pad) bf16; b: (1, Cout_pad) f32."""
    orig = x.shape
    cin = orig[-1]
    cout = w.shape[1]
    m = int(np.prod(orig[:-1]))
    tile_m = min(tile_m, _round_up(m, 8))
    m_pad = _round_up(m, tile_m)
    x2 = x.reshape(m, cin).astype(jnp.bfloat16)
    if m_pad != m:
        x2 = jnp.pad(x2, ((0, m_pad - m), (0, 0)))

    out = pl.pallas_call(
        _matmul_kernel(relu),
        out_shape=jax.ShapeDtypeStruct((m_pad, cout), out_dtype),
        grid=(m_pad // tile_m,),
        in_specs=[
            pl.BlockSpec((tile_m, cin), lambda i: (i, 0)),
            _const_spec((cin, cout)),
            _const_spec((1, cout)),
        ],
        out_specs=pl.BlockSpec((tile_m, cout), lambda i: (i, 0)),
        compiler_params=pltpu.CompilerParams(
            dimension_semantics=("parallel",),
            vmem_limit_bytes=VMEM_LIMIT),
    )(x2, w, b)

    if m_pad != m:
        out = out[:m]
    return out.reshape(orig[:-1] + (cout,))


# ---------------------------------------------------------------------------
# Global average pool (AdaptiveAvgPool2d((1,1))) with tiled H*W accumulation
# ---------------------------------------------------------------------------

def _gap_kernel(inv_hw):
    def kernel(x_ref, o_ref):
        @pl.when(pl.program_id(1) == 0)
        def _():
            o_ref[...] = jnp.zeros_like(o_ref)

        o_ref[...] += jnp.sum(x_ref[...].astype(jnp.float32), axis=1,
                              keepdims=True)

        @pl.when(pl.program_id(1) == pl.num_programs(1) - 1)
        def _():
            o_ref[...] = o_ref[...] * inv_hw
    return kernel


def global_avg_pool(x, hw_tile=2048):
    """(N, H, W, C) -> (N, 1, C) f32 mean over H*W."""
    N, H, W, C = x.shape
    HW = H * W
    hw_tile = min(hw_tile, _round_up(HW, 8))
    hw_pad = _round_up(HW, hw_tile)
    x2 = x.reshape(N, HW, C)
    if hw_pad != HW:
        x2 = jnp.pad(x2, ((0, 0), (0, hw_pad - HW), (0, 0)))   # zeros: sum unchanged

    out = pl.pallas_call(
        _gap_kernel(1.0 / float(HW)),
        out_shape=jax.ShapeDtypeStruct((N, 1, C), jnp.float32),
        grid=(N, hw_pad // hw_tile),
        in_specs=[pl.BlockSpec((1, hw_tile, C), lambda n, j: (n, j, 0))],
        out_specs=pl.BlockSpec((1, 1, C), lambda n, j: (n, 0, 0)),
        compiler_params=pltpu.CompilerParams(
            dimension_semantics=("parallel", "arbitrary"),
            vmem_limit_bytes=VMEM_LIMIT),
    )(x2)
    return out


# ---------------------------------------------------------------------------
# Fused ASPP kernel: aspp0 + 3 dilated dw+pw branches + fuse conv
# (the pooling branch arrives pre-folded as a spatially constant bias)
# ---------------------------------------------------------------------------

def _aspp_kernel(H, W, TH, CP, pad_h, pad_w, dils):
    THW = TH * W

    def kernel(xp_ref, poolf_ref, w0_ref, b0_ref,
               dw1w, dw1b, pw1w, pw1b,
               dw2w, dw2b, pw2w, pw2b,
               dw3w, dw3b, pw3w, pw3b,
               wf01_ref, wf23_ref, bf_ref, o_ref):
        row0 = pl.program_id(1) * TH

        def window(dy, dx):
            # H (major axis) offsets are free; W (sublane) offsets are static and
            # the shared pad is a multiple of 8, so the centre / d%8==0 taps are
            # aligned (no relayout copies).  TODO(synk): pltpu.roll for the rest.
            return xp_ref[0, pl.ds(row0 + pad_h + dy, TH),
                          pad_w + dx:pad_w + dx + W, :]

        # aspp0: 1x1 conv straight on the bf16 centre window (no f32 round trip)
        xc = window(0, 0).reshape(THW, CP)
        x0 = jnp.maximum(
            jnp.dot(xc, w0_ref[...], preferred_element_type=jnp.float32)
            + b0_ref[...], 0.0).astype(jnp.bfloat16)

        def dilated_branch(d, dww, dwb, pww, pwb):
            wv = dww[...]                                   # (3, 3, CP) bf16
            dwacc = jnp.zeros((TH, W, CP), jnp.float32)
            for ky in range(3):
                dy = (ky - 1) * d
                if abs(dy) >= H:       # tap window lies entirely in the zero pad
                    continue
                for kx in range(3):
                    dx = (kx - 1) * d
                    if abs(dx) >= W:
                        continue
                    # bf16 tap * bf16 weight on the VPU, f32 accumulation
                    dwacc = dwacc + window(dy, dx) * wv[ky, kx]
            dwv = jnp.maximum(dwacc.reshape(THW, CP) + dwb[...],
                              0.0).astype(jnp.bfloat16)
            return jnp.maximum(
                jnp.dot(dwv, pww[...], preferred_element_type=jnp.float32)
                + pwb[...], 0.0).astype(jnp.bfloat16)

        # pair branch outputs so the fuse matmuls run with K=256 (fills the
        # 256-deep MXU on v6e/v7x); at most two branch outputs are live at once.
        x1 = dilated_branch(dils[0], dw1w, dw1b, pw1w, pw1b)
        acc = jnp.dot(jnp.concatenate([x0, x1], axis=-1), wf01_ref[...],
                      preferred_element_type=jnp.float32)
        x2 = dilated_branch(dils[1], dw2w, dw2b, pw2w, pw2b)
        x3 = dilated_branch(dils[2], dw3w, dw3b, pw3w, pw3b)
        acc = acc + jnp.dot(jnp.concatenate([x2, x3], axis=-1), wf23_ref[...],
                            preferred_element_type=jnp.float32)

        # pooling branch enters as a precomputed spatially constant bias
        out = jnp.maximum(acc + poolf_ref[0] + bf_ref[...], 0.0)
        o_ref[0] = out.astype(o_ref.dtype)

    return kernel


def aspp_fused(C4, pool_fused, p):
    """C4: (N, H, W, CP) bf16; pool_fused: (N, 1, CP) f32 (pool branch already
       passed through the fuse conv's pool slice).  Returns (N, H, W, CP) bf16."""
    N, H, W, CP = C4.shape
    dils = p['dilations']
    # Pad only as far as taps can actually reach inside the image (taps reading
    # only zero padding are skipped in-kernel, exactly), rounded up to the 8-row
    # sublane tile so the centre window slices at aligned offsets.
    pad_h = _round_up(max([d for d in dils if d < H], default=0), 8)
    pad_w = _round_up(max([d for d in dils if d < W], default=0), 8)
    xp = C4
    if pad_h or pad_w:
        xp = jnp.pad(C4, ((0, 0), (pad_h, pad_h), (pad_w, pad_w), (0, 0)))
    Hp, Wp = H + 2 * pad_h, W + 2 * pad_w
    RT = 2 if H % 2 == 0 else 1      # >=2 parallel steps per image (v7x, 2 TCs)
    TH = H // RT

    in_specs = [
        pl.BlockSpec((1, Hp, Wp, CP), lambda n, r: (n, 0, 0, 0)),   # revisited
        pl.BlockSpec((1, 1, CP), lambda n, r: (n, 0, 0)),
        _const_spec((CP, CP)), _const_spec((1, CP)),
    ]
    args = [xp, pool_fused, p['aspp0_w'], p['aspp0_b']]
    for i in (1, 2, 3):
        in_specs += [_const_spec((3, 3, CP)), _const_spec((1, CP)),
                     _const_spec((CP, CP)), _const_spec((1, CP))]
        args += [p[f'aspp{i}_dw_w'], p[f'aspp{i}_dw_b'],
                 p[f'aspp{i}_pw_w'], p[f'aspp{i}_pw_b']]
    in_specs += [_const_spec((2 * CP, CP)), _const_spec((2 * CP, CP)),
                 _const_spec((1, CP))]
    args += [p['fuse_w_01'], p['fuse_w_23'], p['fuse_b']]

    out = pl.pallas_call(
        _aspp_kernel(H, W, TH, CP, pad_h, pad_w, tuple(dils)),
        out_shape=jax.ShapeDtypeStruct((N, H * W, CP), jnp.bfloat16),
        grid=(N, RT),
        in_specs=in_specs,
        out_specs=pl.BlockSpec((1, TH * W, CP), lambda n, r: (n, r, 0)),
        compiler_params=pltpu.CompilerParams(
            dimension_semantics=("parallel", "parallel"),
            vmem_limit_bytes=VMEM_LIMIT),
    )(*args)
    return out.reshape(N, H, W, CP)


# ---------------------------------------------------------------------------
# Fused LightConvBlock kernel: grouped depthwise 3x3 + 1x1 conv (+BN+ReLU each)
# Multiple input groups fold a channel concat via one stacked K=ng*128 matmul.
# ---------------------------------------------------------------------------

def _light_block_kernel(H, W, TH, CP, d, pad_h, pad_w, ng):
    THW = TH * W

    def kernel(*refs):
        o_ref = refs[-1]
        pwb_ref = refs[-2]
        pww_ref = refs[-3]
        row0 = pl.program_id(1) * TH

        dwvs = []
        for g in range(ng):
            xp_ref, dww_ref, dwb_ref = refs[3 * g:3 * g + 3]
            wv = dww_ref[...]                              # (3, 3, CP) bf16
            dwacc = jnp.zeros((TH, W, CP), jnp.float32)
            for ky in range(3):
                dy = (ky - 1) * d
                if abs(dy) >= H:
                    continue
                for kx in range(3):
                    dx = (kx - 1) * d
                    if abs(dx) >= W:
                        continue
                    tap = xp_ref[0, pl.ds(row0 + pad_h + dy, TH),
                                 pad_w + dx:pad_w + dx + W, :]
                    dwacc = dwacc + tap * wv[ky, kx]       # bf16 mul, f32 acc
            dwvs.append(jnp.maximum(dwacc.reshape(THW, CP) + dwb_ref[...],
                                    0.0).astype(jnp.bfloat16))

        # implicit channel concat -> one K = ng*128 pointwise matmul
        dwv = dwvs[0] if ng == 1 else jnp.concatenate(dwvs, axis=-1)
        out = jnp.maximum(
            jnp.dot(dwv, pww_ref[...], preferred_element_type=jnp.float32)
            + pwb_ref[...], 0.0)
        o_ref[0] = out.astype(o_ref.dtype)

    return kernel


def light_conv_block(xs, dw_ws, dw_bs, pw_w, pw_b, dilation=1):
    """xs: list of (N, H, W, 128) channel groups (the implicit concat);
       dw weights per group; pw_w is the row-stacked (ng*128, 128) weight."""
    N, H, W, CP = xs[0].shape
    d = int(dilation)
    ng = len(xs)
    pad_h = d                          # H offsets need no alignment
    pad_w = _round_up(d, 8)            # keep the centre tap's W offset aligned
    Hp, Wp = H + 2 * pad_h, W + 2 * pad_w
    RT = 2 if H % 2 == 0 else 1
    TH = H // RT
    COUT = pw_w.shape[1]

    args, in_specs = [], []
    for x, dww, dwb in zip(xs, dw_ws, dw_bs):
        # TODO(synk): at production sizes handle borders in-kernel (masks) instead
        # of materializing a padded HBM copy of the full-resolution activation.
        xp = jnp.pad(x, ((0, 0), (pad_h, pad_h), (pad_w, pad_w), (0, 0)))
        args += [xp, dww, dwb]
        in_specs += [pl.BlockSpec((1, Hp, Wp, CP), lambda n, r: (n, 0, 0, 0)),
                     _const_spec((3, 3, CP)),
                     _const_spec((1, CP))]
    args += [pw_w, pw_b]
    in_specs += [_const_spec((ng * CP, COUT)), _const_spec((1, COUT))]

    out = pl.pallas_call(
        _light_block_kernel(H, W, TH, CP, d, pad_h, pad_w, ng),
        out_shape=jax.ShapeDtypeStruct((N, H * W, COUT), jnp.bfloat16),
        grid=(N, RT),
        in_specs=in_specs,
        out_specs=pl.BlockSpec((1, TH * W, COUT), lambda n, r: (n, r, 0)),
        compiler_params=pltpu.CompilerParams(
            dimension_semantics=("parallel", "parallel"),
            vmem_limit_bytes=VMEM_LIMIT),
    )(*args)
    return out.reshape(N, H, W, COUT)


# ---------------------------------------------------------------------------
# Glue: bilinear (align_corners=True) resampling via interpolation matrices
# ---------------------------------------------------------------------------

def _interp_matrix(in_size, out_size):
    if in_size == 1:
        return jnp.ones((out_size, 1), jnp.float32)
    src = np.arange(out_size, dtype=np.float64) * (in_size - 1) / max(out_size - 1, 1)
    i0 = np.clip(np.floor(src).astype(np.int64), 0, in_size - 1)
    i1 = np.minimum(i0 + 1, in_size - 1)
    frac = src - i0
    m = np.zeros((out_size, in_size), np.float64)
    m[np.arange(out_size), i0] += (1.0 - frac)
    m[np.arange(out_size), i1] += frac
    return jnp.asarray(m, jnp.float32)


def bilinear_align_corners(x, out_h, out_w):
    """F.interpolate(mode='bilinear', align_corners=True) on NHWC, kept in bf16."""
    # TODO(synk): glue (XLA einsum); fusing the fixed 2x stencil into a
    # row-blocked fuse0 kernel would remove this HBM round trip entirely.
    N, H, W, C = x.shape
    if H == 1 and W == 1:
        return jnp.broadcast_to(x, (N, out_h, out_w, C))
    xb = x.astype(jnp.bfloat16)
    Wh = _interp_matrix(H, out_h).astype(jnp.bfloat16)
    Ww = _interp_matrix(W, out_w).astype(jnp.bfloat16)
    t = jnp.einsum('ih,nhwc->niwc', Wh, xb, preferred_element_type=jnp.bfloat16)
    return jnp.einsum('jw,niwc->nijc', Ww, t, preferred_element_type=jnp.bfloat16)


# ---------------------------------------------------------------------------
# Forward pass (mirrors DeepLabV3PlusHead.forward)
# ---------------------------------------------------------------------------

def deeplabv3plus_head_forward(params, C1_nchw, C4_nchw):
    p = params
    LP = LANE
    C1 = _pad_last(jnp.transpose(C1_nchw, (0, 2, 3, 1)), LP).astype(jnp.bfloat16)
    C4 = _pad_last(jnp.transpose(C4_nchw, (0, 2, 3, 1)), LP).astype(jnp.bfloat16)
    H1, W1 = C1.shape[1], C1.shape[2]

    # --- ASPP ---
    # pooling branch: tiled global avg pool, 1x1 conv+BN+ReLU, then pre-fold it
    # through the fuse conv's pool slice (the broadcast-upsample of a 1x1 map is
    # a spatially constant additive term of the fuse conv).
    pool = global_avg_pool(C4)                                        # (N,1,LP) f32
    pool = pointwise_conv(pool, p['aspp_pool_w'], p['aspp_pool_b'],
                          relu=True)                                  # (N,1,LP) bf16
    pool_fused = pointwise_conv(pool, p['fuse_w_pool'], p['zeros_b'],
                                relu=False, out_dtype=jnp.float32)    # (N,1,LP) f32

    aspp = aspp_fused(C4, pool_fused, p)                              # (N,H4,W4,LP)

    # --- head ---
    C4u = bilinear_align_corners(aspp, H1, W1).astype(jnp.bfloat16)   # upsample
    c1 = pointwise_conv(C1, p['c1_w'], p['c1_b'], relu=True)          # (N,H1,W1,LP)

    # fuse0: LightConvBlock on the implicit concat [C4u, c1] (two channel groups)
    x = light_conv_block([C4u, c1],
                         [p['fuse0_dwA_w'], p['fuse0_dwB_w']],
                         [p['fuse0_dwA_b'], p['fuse0_dwB_b']],
                         p['fuse0_pw_w'], p['fuse0_pw_b'], dilation=1)
    # fuse1: LightConvBlock
    x = light_conv_block([x], [p['fuse1_dw_w']], [p['fuse1_dw_b']],
                         p['fuse1_pw_w'], p['fuse1_pw_b'], dilation=1)

    # predict conv (1x1, bias, no BN / act); store bf16 logits (narrow writeback),
    # slice off the lane padding, only then cast to f32.
    x = pointwise_conv(x, p['pred_w'], p['pred_b'], relu=False,
                       out_dtype=jnp.bfloat16)
    x = x[..., :p['num_classes']].astype(jnp.float32)
    return jnp.transpose(x, (0, 3, 1, 2))                             # NHWC -> NCHW


# ---------------------------------------------------------------------------
# Main
# ---------------------------------------------------------------------------

if __name__ == "__main__":
    # small, consistent shapes:
    #   C1 at stride 4:  (N, c1_inplanes, 16, 16)
    #   C4 at stride 8:  (N, c4_inplanes,  8,  8)   (output_stride = 8)
    N = 2
    c1_inplanes, c4_inplanes = 8, 16
    c1_planes, planes = 8, 16
    num_classes = 8
    output_stride = 8

    key = jax.random.PRNGKey(0)
    kp, k1, k4 = jax.random.split(key, 3)

    params = make_params(kp, c1_inplanes, c4_inplanes, c1_planes, planes,
                         output_stride, num_classes)

    C1 = jax.random.normal(k1, (N, c1_inplanes, 16, 16), jnp.float32)
    C2 = None  # unused by the head (mirrors the PyTorch tuple unpack)
    C3 = None
    C4 = jax.random.normal(k4, (N, c4_inplanes, 8, 8), jnp.float32)

    out = deeplabv3plus_head_forward(params, C1, C4)
    out = jax.block_until_ready(out)

    assert out.shape == (N, num_classes, 16, 16), out.shape
    assert bool(jnp.all(jnp.isfinite(out)))
    print("KERNEL_OK")
</pallas_src>

<mosaic_0001>
module attributes {stable_mosaic.version = 11 : i64} {
  func.func @kernel(%arg0: i32, %arg1: i32, %arg2: memref<1x64x128xbf16, #tpu.memory_space<vmem>>, %arg3: memref<1x1x128xf32, #tpu.memory_space<vmem>>) attributes {dimension_semantics = [#tpu.dimension_semantics<parallel>, #tpu.dimension_semantics<arbitrary>], iteration_bounds = array<i64: 2, 1>, scalar_prefetch = 0 : i64, scratch_operands = 0 : i64, tpu.core_type = #tpu.core_type<tc>, window_params = [{transform_indices = @transform_0, window_bounds = array<i64: 1, 64, 128>}, {transform_indices = @transform_1, window_bounds = array<i64: 1, 1, 128>}]} {
    %c0_i32 = arith.constant 0 : i32
    %0 = arith.cmpi eq, %arg1, %c0_i32 : i32
    %1 = arith.extui %0 : i1 to i32
    %c0_i32_0 = arith.constant 0 : i32
    %2 = arith.cmpi ne, %1, %c0_i32_0 : i32
    scf.if %2 {
      %cst_11 = arith.constant 0.000000e+00 : f32
      %13 = vector.broadcast %cst_11 : f32 to vector<1x1x128xf32>
      %c0_12 = arith.constant 0 : index
      %c0_13 = arith.constant 0 : index
      %c0_14 = arith.constant 0 : index
      %14 = vector.load %arg3[%c0_12, %c0_13, %c0_14] : memref<1x1x128xf32, #tpu.memory_space<vmem>>, vector<1x1x128xf32>
      tpu.vector_store %arg3[%c0_12, %c0_13, %c0_14], %13 {strides = array<i32>} : memref<1x1x128xf32, #tpu.memory_space<vmem>>, vector<1x1x128xf32>,
    } else {
    }
    %c0 = arith.constant 0 : index
    %c0_1 = arith.constant 0 : index
    %c0_2 = arith.constant 0 : index
    %3 = vector.load %arg3[%c0, %c0_1, %c0_2] : memref<1x1x128xf32, #tpu.memory_space<vmem>>, vector<1x1x128xf32>
    %c0_3 = arith.constant 0 : index
    %c0_4 = arith.constant 0 : index
    %c0_5 = arith.constant 0 : index
    %4 = vector.load %arg2[%c0_3, %c0_4, %c0_5] : memref<1x64x128xbf16, #tpu.memory_space<vmem>>, vector<1x64x128xbf16>
    %5 = arith.extf %4 : vector<1x64x128xbf16> to vector<1x64x128xf32>
    %cst = arith.constant dense<0.000000e+00> : vector<1x128xf32>
    %6 = vector.multi_reduction <add>, %5, %cst [1] : vector<1x64x128xf32> to vector<1x128xf32>
    %7 = vector.shape_cast %6 : vector<1x128xf32> to vector<1x1x128xf32>
    %8 = arith.addf %3, %7 : vector<1x1x128xf32>
    %c0_6 = arith.constant 0 : index
    %c0_7 = arith.constant 0 : index
    %c0_8 = arith.constant 0 : index
    %9 = vector.load %arg3[%c0_6, %c0_7, %c0_8] : memref<1x1x128xf32, #tpu.memory_space<vmem>>, vector<1x1x128xf32>
    tpu.vector_store %arg3[%c0_6, %c0_7, %c0_8], %8 {strides = array<i32>} : memref<1x1x128xf32, #tpu.memory_space<vmem>>, vector<1x1x128xf32>,
    %c0_i32_9 = arith.constant 0 : i32
    %10 = arith.cmpi eq, %arg1, %c0_i32_9 : i32
    %11 = arith.extui %10 : i1 to i32
    %c0_i32_10 = arith.constant 0 : i32
    %12 = arith.cmpi ne, %11, %c0_i32_10 : i32
    scf.if %12 {
      %c0_11 = arith.constant 0 : index
      %c0_12 = arith.constant 0 : index
      %c0_13 = arith.constant 0 : index
      %13 = vector.load %arg3[%c0_11, %c0_12, %c0_13] : memref<1x1x128xf32, #tpu.memory_space<vmem>>, vector<1x1x128xf32>
      %cst_14 = arith.constant 1.562500e-02 : f32
      %14 = vector.broadcast %cst_14 : f32 to vector<1x1x128xf32>
      %15 = arith.mulf %13, %14 : vector<1x1x128xf32>
      %c0_15 = arith.constant 0 : index
      %c0_16 = arith.constant 0 : index
      %c0_17 = arith.constant 0 : index
      %16 = vector.load %arg3[%c0_15, %c0_16, %c0_17] : memref<1x1x128xf32, #tpu.memory_space<vmem>>, vector<1x1x128xf32>
      tpu.vector_store %arg3[%c0_15, %c0_16, %c0_17], %15 {strides = array<i32>} : memref<1x1x128xf32, #tpu.memory_space<vmem>>, vector<1x1x128xf32>,
    } else {
    }
    return
  }
  func.func @transform_0(%arg0: i32, %arg1: i32) -> (i32, i32, i32) {
    %c0_i32 = arith.constant 0 : i32
    %c0_i32_0 = arith.constant 0 : i32
    return %arg0, %arg1, %c0_i32 : i32, i32, i32
  }
  func.func @transform_1(%arg0: i32, %arg1: i32) -> (i32, i32, i32) {
    %c0_i32 = arith.constant 0 : i32
    %c0_i32_0 = arith.constant 0 : i32
    %c0_i32_1 = arith.constant 0 : i32
    return %arg0, %c0_i32, %c0_i32_0 : i32, i32, i32
  }
}

</mosaic_0001>

<bundles_post_ra>
// kernel: tpu_custom_call.1
= control target key start
LH: loop header
LB: loop body
LE: loop exit
PB: predicated region body
PF: predicated region fallthrough
CT: control target
= control target key end

     0   :  { %6 = vsyncpa [#allocation3], 0  ;;  %s692_s0 = inlined_call_operand.hbm [shape: bf16[2,64,128], index: 0, kind: input, shape index: {}]   ;;  %s693_s1 = inlined_call_operand.hbm [shape: f32[2,1,128], index: 1, kind: output, shape index: {}]  }
   0x1   :  { %8 = vsyncpa [#allocation3 + $0x1], 0 }
   0x2   :  { %9 = vsyncpa [#allocation4], 0 }
   0x3   :  { %11 = vsyncpa [#allocation4 + $0x1], 0  ;;  %s510_s6 = smov 0   ;;  %s512_s7 = smov 0  }
   0x4   :  { %s514_s8 = smov 0   ;;  %s516_s9 = smov 0  }
   0x5   :  { %s518_s10 = smov 0   ;;  %s520_s11 = smov 0  }
   0x6 LB: > { %s284_s12 = sadd.s32 4294967295, %s493_s11   ;;  %s285_s13 = sadd.s32 4294967294, %s493_s11   ;;  %s493_s11 = sphi %s520_s11, %s17_s11   ;;  %s489_s10 = sphi %s518_s10, %s708_s10   ;;  %s485_s9 = sphi %s516_s9, %s707_s9   ;;  %s481_s8 = sphi %s514_s8, %s706_s8   ;;  %s477_s7 = sphi %s512_s7, %s705_s7   ;;  %s473_s6 = sphi %s510_s6, %s704_s6  }
   0x7   : > { %s29_s14 = sadd.s32 1, %s489_s10  ;;  %s38_s15 = sadd.s32 1, %s481_s8 }
   0x8   : > { %p31_p0 = scmp.ge.s32.totalorder %s29_s14, 2  ;;  %p45_p1 = scmp.ne.s32.totalorder %s481_s8, %s477_s7 }
   0x9   : > { %p46_p2 = scmp.eq.s32.totalorder %s493_s11, 0  ;;  %p51_p3 = scmp.ne.s32.totalorder %s477_s7, %s473_s6 }
   0xa   : > { %s710_s14 = smov (%p31_p0, %s29_s14), 0  ;;  %p52_p5 = scmp.eq.s32.totalorder %s284_s12, 0 }
   0xb   : > { %p551_p4 = por %p46_p2, %p45_p1  ;;  %s33_s17 = ssub.s32 %s489_s10, %s710_s14 }
   0xc   : > { %p75_p6 = scmp.eq.s32.totalorder %s284_s12, 1  ;;  %p36_p7 = scmp.eq.s32.totalorder %s33_s17, 0 }
   0xd   : > { %p557_p8 = por %p52_p5, %p51_p3  ;;  %p81_p10 = scmp.eq.s32.totalorder %s285_s13, 1 }
   0xe   : > { %p561_p9 = por %p75_p6, %p45_p1  ;;  %p328_p13 = scmp.lt.s32.totalorder %s493_s11, 2 }
   0xf   : > { %s566_s20 = scalar_select %p36_p7, %s481_s8, %s38_s15  }
  0x10   : > { %s697_s19 = scalar_select %p561_p9, 1, 0 }
  0x11   : > { %p568_p11 = por %p81_p10, %p51_p3  ;;  %s101_s22 = sand.u32 1, %s481_s8  }
  0x12   : > { %s288_s23 = sshll.u32 %s101_s22, 5  ;;  %s296_s24 = sshll.u32 %s489_s10, 9 }
  0x13   : > { %s698_s21 = scalar_select %p568_p11, 1, 0 }
  0x14   : > { %s579_s27 = scalar_lea.hbm %s692_s0, %s296_s24  ;;  %s105_s28 = scalar_lea.vmem [#allocation2], %s288_s23 }
  0x15   : > { %s114_s29 = sshll.u32 %s105_s28, 4  ;;  %p585_p0 = pnand %p328_p13, %p551_p4  ;;  %s581_s29 = int_to_ptr.vmem [resolvable:$true] %s114_s29 }
  0x16   : > { %s590_s2 = scalar_lea.sflag [#allocation3], %s101_s22  ;;  %s381_s3 = scalar_lea.hbm %s579_s27, 512 }
  0x17   : > { %p382_p2 = scmp.ne.s32.totalorder %s579_s27, %s381_s3  ;;  %p383_p3 = pneg %p585_p0 }
  0x18   : > { %s386_s12 = scalar_lea.hbm %s692_s0, 1024  ;;  %p387_p4 = scmp.lt.u32.totalorder %s579_s27, %s692_s0 }
  0x19   : > { %p384_p5 = pnand %p383_p3, %p382_p2  ;;  %p388_p7 = scmp.lt.u32.totalorder %s386_s12, %s381_s3 }
  0x1a   : > { %p390_p13 = scmp.lt.u32.totalorder %s381_s3, %s579_s27 }
  0x1b   : > { %p385_p6 = pneg %p384_p5  ;;  %p389_p10 = por %p388_p7, %p387_p4 }
  0x1d   : > { %p391_p12 = por %p390_p13, %p389_p10 }
  0x1f   : > { %p392_p1 = pnand %p391_p12, %p385_p6 }
  0x21   : > { %395 = shalt.err (!%p392_p1)
}
  0x22   : > { %s396_s16 = scalar_lea.vmem %s581_s29, 512  ;;  %s495_s17 = smov [#allocation2]  }
  0x23   : > { %p397_p2 = scmp.ne.s32.totalorder %s581_s29, %s396_s16  ;;  %s401_s22 = sshll.u32 %s495_s17, 4  ;;  %s402_s22 = int_to_ptr.vmem [resolvable:$false] %s401_s22 }
  0x24   : > { %s403_s23 = scalar_lea.vmem %s402_s22, 1024  ;;  %p404_p9 = scmp.lt.s32.totalorder %s581_s29, %s402_s22 }
  0x25   : > { %p399_p5 = pnand %p397_p2, %p383_p3  ;;  %p405_p4 = scmp.lt.s32.totalorder %s403_s23, %s396_s16 }
  0x27   : > { %p400_p11 = pneg %p399_p5  ;;  %p406_p7 = por %p405_p4, %p404_p9 }
  0x29   : > { %p407_p10 = pnand %p406_p7, %p400_p11 }
  0x2b   : > { %410 = shalt.err (!%p407_p10)
}
  0x2c   : > { %s496_s24 = smov 64   ;;  %s497_s25 = smov 4  }
  0x2d   : > { %323 = dma.hbm_to_vmem [thread:$0]  (!%p585_p0), %s579_s27, 512, %s581_s29, %s590_s2, %s496_s24, %s496_s24, %s497_s25  }
  0x2e   : > { %p122_p12 = scmp.lt.s32.totalorder %s493_s11, 3  ;;  %p700_p1 = scmp.ge.s32.totalorder %s493_s11, 1 }
  0x30   : > { %p123_p3 = pnand %p700_p1, %p122_p12 }
  0x31   : > { %s622_s26 = sand.u32 (!%p123_p3), 1, %s477_s7  }
  0x32   : > { %126 = sbr.rel (%p123_p3) target bundleno = 113 (0x71), region = 24  ;;  %s292_s28 = sshll.u32 (!%p123_p3), %s622_s26, 5 }
  0x33   : > { %s129_s3 = scalar_lea.sflag (!%p123_p3), [#allocation3], %s622_s26  ;;  %s132_s4 = scalar_lea.vmem (!%p123_p3), [#allocation2], %s292_s28 }
  0x39   : > { %464 = dma.done.wait (%p557_p8), %s129_s3, 512  }
  0x3a   : > { %466 = vsyncadd (%p557_p8), %s129_s3, 4294966784  ;;  %s631_s27 = scalar_lea.vmem [#allocation5], %s622_s26  ;;  %v498_v0 = vmov 0.0   ;;  %v298_v1 = vld [vmem:[%s132_s4] sm:$0xff]   ;;  %v313_v2 = vld [vmem:[%s132_s4 + $0x8] sm:$0xff]   ;;  %s293_s18 = sshll.u32 %s485_s9, 4 }
  0x3b   : > { %155 = vst [vmem:[%s631_s27] sm:$0x1] %v498_v0  ;;  %v299_v3 = vunpack.c.l.bf16 %v298_v1  ;;  %v300_v4 = vunpack.c.h.bf16 %v298_v1  ;;  %v303_v5 = vunpack.c.l.bf16 %v313_v2  ;;  %v314_v6 = vld [vmem:[%s132_s4 + $0x10] sm:$0xff]   ;;  %v304_v7 = vunpack.c.h.bf16 %v313_v2  ;;  %v315_v11 = vld [vmem:[%s132_s4 + $0x18] sm:$0xff]   ;;  %s207_s29 = sshll.u32 %s631_s27, 4  ;;  %s642_s5 = scalar_lea.hbm %s693_s1, %s293_s18  ;;  %s644_s29 = int_to_ptr.vmem [resolvable:$true] %s207_s29 }
  0x3c   : > { %v307_v9 = vunpack.c.l.bf16 %v314_v6  ;;  %v308_v12 = vunpack.c.h.bf16 %v314_v6  ;;  %v311_v14 = vunpack.c.l.bf16 %v315_v11  ;;  %v312_v16 = vunpack.c.h.bf16 %v315_v11  ;;  %s195_s12 = scalar_lea.sflag [#allocation4], %s622_s26  ;;  %s411_s13 = scalar_lea.vmem %s644_s29, 16 }
  0x3d   : > { %v173_v8 = vadd.f32 %v300_v4, %v299_v3  ;;  %p412_p8 = scmp.ne.s32.totalorder %s644_s29, %s411_s13  ;;  %p701_p9 = scmp.ne.s32.totalorder %s697_s19, 0 }
  0x3e   : > { %s499_s9 = smov [#allocation5]  }
  0x3f   : > { %v174_v10 = vadd.f32 %v303_v5, %v173_v8  ;;  %p413_p11 = pnand %p412_p8, %p701_p9  ;;  %s415_s15 = sshll.u32 %s499_s9, 4  ;;  %s416_s15 = int_to_ptr.vmem [resolvable:$false] %s415_s15 }
  0x40   : > { %s417_s16 = scalar_lea.vmem %s416_s15, 32  ;;  %p418_p6 = scmp.lt.s32.totalorder %s644_s29, %s416_s15 }
  0x41   : > { %v175_v13 = vadd.f32 %v304_v7, %v174_v10  ;;  %p414_p0 = pneg %p413_p11  ;;  %p419_p13 = scmp.lt.s32.totalorder %s417_s16, %s411_s13 }
  0x42   : > { %v156_v25 = vld [vmem:[%s631_s27] sm:$0x1] }
  0x43   : > { %v176_v15 = vadd.f32 %v307_v9, %v175_v13  ;;  %p420_p2 = por %p419_p13, %p418_p6 }
  0x45   : > { %v177_v17 = vadd.f32 %v308_v12, %v176_v15  ;;  %p421_p5 = pnand %p420_p2, %p414_p0 }
  0x47   : > { %v178_v18 = vadd.f32 %v311_v14, %v177_v17 }
  0x49   : > { %v179_v19 = vadd.f32 %v312_v16, %v178_v18 }
  0x4b   : > { %v180_v20 = vrot.slane %v179_v19, 4 }
  0x4d   : > { %v181_v21 = vadd.f32 %v180_v20, %v179_v19 }
  0x4f   : > { %v182_v22 = vrot.slane %v181_v21, 2 }
  0x51   : > { %v183_v23 = vadd.f32 %v182_v22, %v181_v21 }
  0x53   : > { %v184_v24 = vrot.slane %v183_v23, 1 }
  0x55   : > { %v185_v26 = vadd.f32 %v184_v24, %v183_v23 }
  0x57   : > { %v186_v27 = vadd.f32 %v185_v26, %v156_v25 }
  0x59   : > { %187 = vst [vmem:[%s631_s27] sm:$0x1] %v186_v27 }
  0x60   : > { %v191_v28 = vld [vmem:[%s631_s27] sm:$0x1] }
  0x61   : > { %v192_v29 = vmul.f32 0.015625, %v191_v28 }
  0x63   : > { %193 = vst [vmem:[%s631_s27] sm:$0x1] %v192_v29 }
  0x64   : > { %424 = shalt.err (!%p421_p5)
}
  0x65   : > { %s425_s17 = scalar_lea.hbm %s642_s5, 16  ;;  %s429_s24 = scalar_lea.hbm %s693_s1, 32 }
  0x66   : > { %p426_p4 = scmp.ne.s32.totalorder %s642_s5, %s425_s17  ;;  %p430_p12 = scmp.lt.u32.totalorder %s642_s5, %s693_s1 }
  0x67   : > { %p431_p1 = scmp.lt.u32.totalorder %s429_s24, %s425_s17  ;;  %p433_p8 = scmp.lt.u32.totalorder %s425_s17, %s642_s5 }
  0x68   : > { %p427_p7 = pnand %p426_p4, %p701_p9 }
  0x69   : > { %p432_p3 = por %p431_p1, %p430_p12 }
  0x6a   : > { %p428_p10 = pneg %p427_p7 }
  0x6b   : > { %p434_p11 = por %p433_p8, %p432_p3 }
  0x6d   : > { %p435_p0 = pnand %p434_p11, %p428_p10 }
  0x6f   : > { %438 = shalt.err (!%p435_p0)
}
  0x70   : > { %318 = dma.vmem_to_hbm [thread:$0]  (%p701_p9), %s644_s29, 16, %s642_s5, %s195_s12  }
  0x71 PF: > { %s219_s28 = sand.u32 1, %s473_s6   ;;  %p702_p6 = scmp.ne.s32.totalorder %s698_s21, 0 }
  0x72   : > { %p703_p13 = scmp.ge.s32.totalorder %s493_s11, 2  ;;  %s220_s3 = scalar_lea.sflag [#allocation4], %s219_s28 }
  0x74   : > { %p325_p2 = pnand %p703_p13, %p702_p6 }
  0x76   : > { %468 = dma.done.wait (!%p325_p2), %s220_s3, 16  }
  0x77   : > { %470 = vsyncadd (!%p325_p2), %s220_s3, 4294967280  ;;  %s17_s11 = sadd.s32 1, %s493_s11   ;;  %s704_s6 = smov %s477_s7 }
  0x78   : > { %p14_p5 = scmp.ge.s32.totalorder %s17_s11, 4   ;;  %s705_s7 = smov %s481_s8 }
  0x79   : > { %s706_s8 = smov %s566_s20  ;;  %s707_s9 = smov %s489_s10 }
  0x7a   : > { %s708_s10 = smov %s710_s14  ;;  %16 = sbr.rel (!%p14_p5) target bundleno = 6 (0x6), region = 77 }
  0x81   :  { %224 = vsyncpa [#allocation3], 1 }
  0x82   :  { %226 = vsyncpa [#allocation3 + $0x1], 1 }
  0x83   :  { %227 = vsyncpa [#allocation4], 1 }
  0x84   :  { %229 = vsyncpa [#allocation4 + $0x1], 1 }

</bundles_post_ra>
